<compile_context>
chip_gen: v5e
topology: v5e:2x2
jax: 0.10.0
libtpu: 0.0.40
codegen_flags: <defaults>
</compile_context>

<pallas_src>
import math
import functools

import jax
import jax.numpy as jnp
from jax import lax
from jax.experimental import pallas as pl
from jax.experimental.pallas import tpu as pltpu


_LANE_W = 1024      # output last dim: wide, lane-dense -> unmasked vector stores
_MAX_TILE_R = 256   # 256x1024 f32 block = 1 MiB; double-buffered in+out plus f32
                    # temporaries fit the 16 MiB (v5e) / 32 MiB (v6e, v7x) scoped VMEM

_SUPPORTED = ("none", "bernoulli", "gamma", "gumbel", "beta", "normal")


def _to_i32(v: int) -> int:
    """Python int -> equivalent two's-complement int32 literal."""
    v &= 0xFFFFFFFF
    return v - (1 << 32) if v >= (1 << 31) else v


def _hash_u32(h):
    """lowbias32: high-avalanche 32-bit mixer (vectorized, uint32, VPU-only ops)."""
    h = h ^ (h >> 16)
    h = h * jnp.uint32(0x7FEB352D)
    h = h ^ (h >> 15)
    h = h * jnp.uint32(0x846CA68B)
    h = h ^ (h >> 16)
    return h


def _make_dropout_select_kernel(dropout_type: str, gamma: float, alpha: float = 1.0):
    if dropout_type not in _SUPPORTED:
        # TODO(synk): 'chi' (needs Marsaglia-Tsang rejection sampling) and 'laplace'
        # (reference forward leaves `scale` undefined) are not implemented.
        raise NotImplementedError(f"dropout_type={dropout_type!r} not supported")

    inv_gamma = 1.0 / gamma

    def kernel(seed_ref, params_ref, x_ref, o_ref):
        tile_r, width = x_ref.shape
        x = x_ref[...]

        # ---- counter-based PRNG: unique per element AND per grid block -------
        row = lax.broadcasted_iota(jnp.int32, (tile_r, width), 0)
        col = lax.broadcasted_iota(jnp.int32, (tile_r, width), 1)
        base_row = pl.program_id(0) * tile_r
        counter = (base_row + row) * width + col            # global flat index (wraps; fine for hashing)
        seed_mix = seed_ref[0] * jnp.int32(_to_i32(0x9E3779B9))

        def uniform01(stream):
            offs = jnp.int32(_to_i32(stream * 0x85EBCA6B + 0x165667B1))
            h = lax.bitcast_convert_type(counter + seed_mix + offs, jnp.uint32)
            h = _hash_u32(h)
            # 23 random mantissa bits OR'd into 1.0f, minus 1.0 -> uniform [0, 1)
            mant = (h >> 9) | jnp.uint32(0x3F800000)
            return lax.bitcast_convert_type(mant, jnp.float32) - 1.0

        if dropout_type == "none":
            # F.dropout: drop with prob p, scale survivors by 1/(1-p) (folded into params[1]).
            u = uniform01(0)
            p_thr = params_ref[0]
            mult = params_ref[1].astype(x_ref.dtype)         # stay in native dtype (bf16 friendly)
            o_ref[...] = jnp.where(u >= p_thr, x * mult, jnp.zeros_like(x))

        elif dropout_type == "bernoulli":
            # x * Bernoulli(gamma) * (p/gamma); p/gamma folded into params[1].
            u = uniform01(0)
            mult = params_ref[1].astype(x_ref.dtype)
            o_ref[...] = jnp.where(u < gamma, x * mult, jnp.zeros_like(x))

        else:
            xf = x.astype(jnp.float32)
            coeff = params_ref[1]                            # variant scale, precomputed on host

            if dropout_type == "gamma":
                # Gamma(1, rate=gamma) == Exp(gamma); the 1/gamma is folded into coeff.
                u = uniform01(0)
                noise = -jnp.log(jnp.maximum(1.0 - u, 1e-7))
            elif dropout_type == "gumbel":
                # Gumbel(0, gamma); gamma folded into coeff.
                u = jnp.clip(uniform01(0), 1e-7, 1.0 - 1e-7)
                noise = -jnp.log(-jnp.log(u))
            elif dropout_type == "beta":
                # Beta(1, gamma) via inverse CDF: 1 - (1-u)^(1/gamma)   (pow as exp/log)
                u = uniform01(0)
                noise = 1.0 - jnp.exp(inv_gamma * jnp.log(jnp.maximum(1.0 - u, 1e-7)))
            else:  # "normal": N(0, gamma) via Box-Muller; gamma folded into coeff.
                # TODO(synk): on v7x (EUP-bound) reuse the sin half of Box-Muller to halve
                # transcendentals/element; on v5e/v6e this path is HBM-bound anyway.
                u1 = jnp.maximum(uniform01(0), 1e-7)
                u2 = uniform01(1)
                noise = jnp.sqrt(-2.0 * jnp.log(u1)) * jnp.cos((2.0 * math.pi) * u2)

            o_ref[...] = (xf + noise * coeff).astype(o_ref.dtype)

    return kernel


@functools.partial(jax.jit, static_argnames=("dropout_type", "dropout_gama", "training"))
def dropout_select(x, p, seed, dropout_type, dropout_gama=0.5, training=True):
    """Pallas implementation of DropoutSelect.forward(x, p, training)."""
    if not training:
        return x

    gamma = float(dropout_gama)
    alpha = 1.0

    # All scalar math (thresholds / scales) happens here, off the vector path.
    if dropout_type == "none":
        thr, coeff = p, 1.0 / (1.0 - p)
    elif dropout_type == "bernoulli":
        thr, coeff = gamma, p / gamma
    elif dropout_type == "gamma":
        thr, coeff = 0.0, (p - alpha * gamma) * alpha ** (-0.5) / gamma
    elif dropout_type == "gumbel":
        thr, coeff = 0.0, gamma * math.sqrt(6.0) * (p - 0.5772 * gamma) / math.pi
    elif dropout_type == "beta":
        thr, coeff = 0.0, (alpha + gamma) * math.sqrt((alpha + gamma + 1.0) / alpha) * (
            p - alpha / (alpha + gamma))
    elif dropout_type == "normal":
        thr, coeff = 0.0, gamma * p
    else:
        raise NotImplementedError(f"dropout_type={dropout_type!r} not supported")

    orig_shape = x.shape
    orig_dtype = x.dtype
    total = int(x.size)

    # Lane-dense 2D slab (rows, 1024), padded to a whole number of row tiles.
    rows_needed = pl.cdiv(total, _LANE_W)
    if rows_needed <= _MAX_TILE_R:
        tile_r = max(int(rows_needed), 1)
        rows = tile_r
    else:
        tile_r = _MAX_TILE_R
        rows = pl.cdiv(rows_needed, tile_r) * tile_r
    padded = rows * _LANE_W

    xf = x.reshape(-1)
    if padded != total:
        xf = jnp.pad(xf, (0, padded - total))
    x2 = xf.reshape(rows, _LANE_W)

    seed_arr = jnp.asarray([seed], dtype=jnp.int32)
    params = jnp.array([thr, coeff], dtype=jnp.float32)

    kernel = _make_dropout_select_kernel(dropout_type, gamma, alpha)

    out2 = pl.pallas_call(
        kernel,
        out_shape=jax.ShapeDtypeStruct((rows, _LANE_W), orig_dtype),
        grid=(rows // tile_r,),
        in_specs=[
            pl.BlockSpec(memory_space=pltpu.MemorySpace.SMEM),    # seed
            pl.BlockSpec(memory_space=pltpu.MemorySpace.SMEM),    # [threshold, scale]
            pl.BlockSpec((tile_r, _LANE_W), lambda i: (i, 0)),    # x tile (auto double-buffered)
        ],
        out_specs=pl.BlockSpec((tile_r, _LANE_W), lambda i: (i, 0)),
        compiler_params=pltpu.CompilerParams(
            dimension_semantics=("parallel",)),                   # megacore / 2 TCs on v7x
    )(seed_arr, params, x2)

    return out2.reshape(-1)[:total].reshape(orig_shape)


if __name__ == "__main__":
    key = jax.random.PRNGKey(0)
    # NCHW input, as in the PyTorch module
    x = jax.random.normal(key, (2, 4, 16, 16), dtype=jnp.float32)
    p = 0.3

    for dt in ["none", "bernoulli", "gamma", "gumbel", "beta", "normal"]:
        y = dropout_select(x, p, seed=42, dropout_type=dt, dropout_gama=0.5, training=True)
        y = jax.block_until_ready(y)
        assert y.shape == x.shape and y.dtype == x.dtype
        assert bool(jnp.all(jnp.isfinite(y)))
        # deterministic in the seed
        y2 = jax.block_until_ready(
            dropout_select(x, p, seed=42, dropout_type=dt, dropout_gama=0.5, training=True))
        assert bool(jnp.all(y == y2))

    # 'none' semantics: ~p of entries zeroed, survivors scaled by 1/(1-p)
    y = jax.block_until_ready(dropout_select(x, p, seed=7, dropout_type="none"))
    frac0 = float(jnp.mean((y == 0).astype(jnp.float32)))
    assert 0.15 < frac0 < 0.45, frac0
    expected = jnp.where(y != 0, x / (1.0 - p), 0.0)
    assert bool(jnp.allclose(y, expected, rtol=1e-5, atol=1e-6))

    # multi-tile grid path: per-block randomness must differ between tiles
    x_big = jnp.ones((512, 1024), dtype=jnp.float32)
    y_big = jax.block_until_ready(dropout_select(x_big, p, seed=3, dropout_type="none"))
    assert y_big.shape == x_big.shape
    frac_big = float(jnp.mean((y_big == 0).astype(jnp.float32)))
    assert 0.25 < frac_big < 0.35, frac_big
    assert not bool(jnp.all(y_big[:256] == y_big[256:]))   # tiles draw different masks

    # training=False path is identity
    y_eval = dropout_select(x, p, seed=42, dropout_type="normal", training=False)
    assert bool(jnp.all(y_eval == x))

    print("KERNEL_OK")
</pallas_src>

<mosaic_0001>
module attributes {stable_mosaic.version = 11 : i64} {
  func.func @kernel(%arg0: i32, %arg1: memref<1xi32, #tpu.memory_space<smem>>, %arg2: memref<2xf32, #tpu.memory_space<smem>>, %arg3: memref<2x1024xf32, #tpu.memory_space<vmem>>, %arg4: memref<2x1024xf32, #tpu.memory_space<vmem>>) attributes {dimension_semantics = [#tpu.dimension_semantics<parallel>], iteration_bounds = array<i64: 1>, scalar_prefetch = 0 : i64, scratch_operands = 0 : i64, tpu.core_type = #tpu.core_type<tc>, window_params = [{transform_indices = @transform_0, window_bounds = array<i64: 1>}, {transform_indices = @transform_1, window_bounds = array<i64: 2>}, {transform_indices = @transform_2, window_bounds = array<i64: 2, 1024>}, {transform_indices = @transform_3, window_bounds = array<i64: 2, 1024>}]} {
    %c0 = arith.constant 0 : index
    %c0_0 = arith.constant 0 : index
    %0 = vector.load %arg3[%c0, %c0_0] : memref<2x1024xf32, #tpu.memory_space<vmem>>, vector<2x1024xf32>
    %1 = tpu.iota {dimensions = array<i32: 0>} : vector<2x1024xi32>
    %2 = tpu.iota {dimensions = array<i32: 1>} : vector<2x1024xi32>
    %c2_i32 = arith.constant 2 : i32
    %3 = arith.muli %arg0, %c2_i32 : i32
    %4 = vector.broadcast %3 : i32 to vector<2x1024xi32>
    %5 = arith.addi %4, %1 : vector<2x1024xi32>
    %c1024_i32 = arith.constant 1024 : i32
    %6 = vector.broadcast %c1024_i32 : i32 to vector<2x1024xi32>
    %7 = arith.muli %5, %6 : vector<2x1024xi32>
    %8 = arith.addi %7, %2 : vector<2x1024xi32>
    %c0_1 = arith.constant 0 : index
    %9 = memref.load %arg1[%c0_1] : memref<1xi32, #tpu.memory_space<smem>>
    %c-1640531527_i32 = arith.constant -1640531527 : i32
    %10 = arith.muli %9, %c-1640531527_i32 : i32
    %11 = vector.broadcast %10 : i32 to vector<2x1024xi32>
    %12 = arith.addi %8, %11 : vector<2x1024xi32>
    %c374761393_i32 = arith.constant 374761393 : i32
    %13 = vector.broadcast %c374761393_i32 : i32 to vector<2x1024xi32>
    %14 = arith.addi %12, %13 : vector<2x1024xi32>
    %15 = tpu.bitcast %14 : vector<2x1024xi32> -> vector<2x1024xi32>
    %c16_i32 = arith.constant 16 : i32
    %16 = vector.broadcast %c16_i32 : i32 to vector<2x1024xi32>
    %17 = arith.shrui %15, %16 : vector<2x1024xi32>
    %18 = arith.xori %15, %17 : vector<2x1024xi32>
    %c2146121005_i32 = arith.constant 2146121005 : i32
    %19 = vector.broadcast %c2146121005_i32 : i32 to vector<2x1024xi32>
    %20 = arith.muli %18, %19 : vector<2x1024xi32>
    %c15_i32 = arith.constant 15 : i32
    %21 = vector.broadcast %c15_i32 : i32 to vector<2x1024xi32>
    %22 = arith.shrui %20, %21 : vector<2x1024xi32>
    %23 = arith.xori %20, %22 : vector<2x1024xi32>
    %c-2073254261_i32 = arith.constant -2073254261 : i32
    %24 = vector.broadcast %c-2073254261_i32 : i32 to vector<2x1024xi32>
    %25 = arith.muli %23, %24 : vector<2x1024xi32>
    %c16_i32_2 = arith.constant 16 : i32
    %26 = vector.broadcast %c16_i32_2 : i32 to vector<2x1024xi32>
    %27 = arith.shrui %25, %26 : vector<2x1024xi32>
    %28 = arith.xori %25, %27 : vector<2x1024xi32>
    %c9_i32 = arith.constant 9 : i32
    %29 = vector.broadcast %c9_i32 : i32 to vector<2x1024xi32>
    %30 = arith.shrui %28, %29 : vector<2x1024xi32>
    %c1065353216_i32 = arith.constant 1065353216 : i32
    %31 = vector.broadcast %c1065353216_i32 : i32 to vector<2x1024xi32>
    %32 = arith.ori %30, %31 : vector<2x1024xi32>
    %33 = tpu.bitcast %32 : vector<2x1024xi32> -> vector<2x1024xf32>
    %cst = arith.constant 1.000000e+00 : f32
    %34 = vector.broadcast %cst : f32 to vector<2x1024xf32>
    %35 = arith.subf %33, %34 : vector<2x1024xf32>
    %c0_3 = arith.constant 0 : index
    %36 = memref.load %arg2[%c0_3] : memref<2xf32, #tpu.memory_space<smem>>
    %c1 = arith.constant 1 : index
    %37 = memref.load %arg2[%c1] : memref<2xf32, #tpu.memory_space<smem>>
    %38 = vector.broadcast %36 : f32 to vector<2x1024xf32>
    %39 = arith.cmpf oge, %35, %38 : vector<2x1024xf32>
    %40 = vector.broadcast %37 : f32 to vector<2x1024xf32>
    %41 = arith.mulf %0, %40 : vector<2x1024xf32>
    %cst_4 = arith.constant 0.000000e+00 : f32
    %42 = vector.broadcast %cst_4 : f32 to vector<2x1024xf32>
    %43 = arith.select %39, %41, %42 : vector<2x1024xi1>, vector<2x1024xf32>
    %c0_5 = arith.constant 0 : index
    %c0_6 = arith.constant 0 : index
    %44 = vector.load %arg4[%c0_5, %c0_6] : memref<2x1024xf32, #tpu.memory_space<vmem>>, vector<2x1024xf32>
    tpu.vector_store %arg4[%c0_5, %c0_6], %43 {strides = array<i32>} : memref<2x1024xf32, #tpu.memory_space<vmem>>, vector<2x1024xf32>,
    return
  }
  func.func @transform_0(%arg0: i32) -> i32 {
    %c0_i32 = arith.constant 0 : i32
    %c0_i32_0 = arith.constant 0 : i32
    return %c0_i32 : i32
  }
  func.func @transform_1(%arg0: i32) -> i32 {
    %c0_i32 = arith.constant 0 : i32
    %c0_i32_0 = arith.constant 0 : i32
    return %c0_i32 : i32
  }
  func.func @transform_2(%arg0: i32) -> (i32, i32) {
    %c0_i32 = arith.constant 0 : i32
    %c0_i32_0 = arith.constant 0 : i32
    return %arg0, %c0_i32 : i32, i32
  }
  func.func @transform_3(%arg0: i32) -> (i32, i32) {
    %c0_i32 = arith.constant 0 : i32
    %c0_i32_0 = arith.constant 0 : i32
    return %arg0, %c0_i32 : i32, i32
  }
}

</mosaic_0001>

<bundles_post_ra>
// kernel: dropout_select.1
= control target key start
LH: loop header
LB: loop body
LE: loop exit
PB: predicated region body
PF: predicated region fallthrough
CT: control target
= control target key end

     0   :  { %9 = vsyncpa [#allocation4], 0  ;;  %s267_s15 = smov [#allocation3]   ;;  %s322_s0 = inlined_call_operand.<no memory space> [shape: s32[1], index: 0, kind: input, shape index: {}]   ;;  %s323_s1 = inlined_call_operand.vmem [shape: f32[2], index: 1, kind: input, shape index: {}]   ;;  %s324_s2 = inlined_call_operand.vmem [shape: f32[2,1024], index: 2, kind: input, shape index: {}]   ;;  %s325_s3 = inlined_call_operand.vmem [shape: f32[2,1024], index: 3, kind: output, shape index: {}]  }
   0x1   :  { %s17_s14 = sshll.u32 %s323_s1, 4  ;;  %s18_s14 = int_to_ptr.vmem [resolvable:$true] %s17_s14 }
   0x2   :  { %20 = dma.vmem_to_smem %s18_s14, 16, %s267_s15, [#allocation4]  }
   0x3   :  { %265 = dma.done.wait [#allocation4], 16  }
   0x4   :  { %266 = vsyncadd [#allocation4], 4294967280 }
   0x5   :  { %27 = sfence }
   0x6   :  { %s251_s16 = sld [smem:[#allocation3 + $0x1]]  ;;  %v30_v0 = vlaneseq  ;;  %s54_s19 = smul.u32 2654435769, %s322_s0  ;;  %v28_v3 = vld [vmem:[%s324_s2] sm:$0xff]  ;;  %v29_v4 = vld [vmem:[%s324_s2 + $0x8] sm:$0xff]  ;;  %vm225_vm0 = vcmask 1041408  }
   0x7   :  { %s168_s0 = sld [smem:[#allocation3]]  ;;  %vm227_vm1 = vcmask 1045508   ;;  %vm229_vm2 = vcmask 1043456  }
   0x8   :  { %v31_v1 = vshrl.u32 %v30_v0, 7  ;;  %v33_v2 = vand.u32 127, %v30_v0  ;;  %v55_v9 = vstv %s54_s19 }
   0xa   :  { %v34_v5 = vadd.s32 128, %v33_v2  ;;  %v35_v6 = vadd.s32 256, %v33_v2  ;;  %v36_v7 = vadd.s32 384, %v33_v2  ;;  %v44_v8 = vmul.u32 1024, %v31_v1 }
   0xb   :  { %v37_v10 = vadd.s32 512, %v33_v2  ;;  %v38_v11 = vadd.s32 640, %v33_v2  ;;  %v39_v12 = vadd.s32 768, %v33_v2  ;;  %v40_v24 = vadd.s32 896, %v33_v2 }
   0xc   :  { %v179_v13 = vstv %s251_s16  ;;  %v45_v14 = vadd.s32 %v44_v8, %v33_v2  ;;  %v46_v15 = vadd.s32 %v44_v8, %v34_v5  ;;  %v47_v16 = vadd.s32 %v44_v8, %v35_v6 }
   0xd   :  { %v180_v17 = vmul.f32 %v179_v13, %v28_v3  ;;  %v181_v18 = vmul.f32 %v179_v13, %v29_v4  ;;  %v48_v19 = vadd.s32 %v44_v8, %v36_v7  ;;  %v49_v25 = vadd.s32 %v44_v8, %v37_v10 }
   0xe   :  { %v56_v20 = vadd.s32 %v55_v9, %v45_v14  ;;  %v57_v21 = vadd.s32 %v55_v9, %v46_v15  ;;  %v58_v22 = vadd.s32 %v55_v9, %v47_v16  ;;  %v50_v28 = vadd.s32 %v44_v8, %v38_v11 }
   0xf   :  { %184 = vst [vmem:[#allocation1] ss:$4 sm:$0xff] %v180_v17  ;;  %v59_v23 = vadd.s32 %v55_v9, %v48_v19  ;;  %v51_v29 = vadd.s32 %v44_v8, %v39_v12  ;;  %v52_v32 = vadd.s32 %v44_v8, %v40_v24  ;;  %v60_v33 = vadd.s32 %v55_v9, %v49_v25 }
  0x10   :  { %186 = vst [vmem:[#allocation1 + $0x20] ss:$4 sm:$0xff] %v181_v18  ;;  %v64_v26 = vadd.s32 374761393, %v56_v20  ;;  %v65_v27 = vadd.s32 374761393, %v57_v21  ;;  %v61_v36 = vadd.s32 %v55_v9, %v50_v28  ;;  %v300_v12 = vstv %s168_s0 }
  0x11   :  { %v66_v30 = vadd.s32 374761393, %v58_v22  ;;  %v67_v31 = vadd.s32 374761393, %v59_v23  ;;  %v62_v37 = vadd.s32 %v55_v9, %v51_v29  ;;  %v63_v40 = vadd.s32 %v55_v9, %v52_v32 }
  0x12   :  { %v72_v34 = vshrl.u32 %v64_v26, 16  ;;  %v73_v35 = vshrl.u32 %v65_v27, 16  ;;  %v68_v41 = vadd.s32 374761393, %v60_v33  ;;  %v69_v44 = vadd.s32 374761393, %v61_v36 }
  0x13   :  { %v74_v38 = vshrl.u32 %v66_v30, 16  ;;  %v75_v39 = vshrl.u32 %v67_v31, 16  ;;  %v70_v45 = vadd.s32 374761393, %v62_v37  ;;  %v71_v48 = vadd.s32 374761393, %v63_v40 }
  0x14   :  { %v80_v42 = vxor.u32 %v72_v34, %v64_v26  ;;  %v81_v43 = vxor.u32 %v73_v35, %v65_v27  ;;  %v76_v49 = vshrl.u32 %v68_v41, 16  ;;  %v77_v52 = vshrl.u32 %v69_v44, 16 }
  0x15   :  { %v82_v46 = vxor.u32 %v74_v38, %v66_v30  ;;  %v83_v47 = vxor.u32 %v75_v39, %v67_v31  ;;  %v78_v53 = vshrl.u32 %v70_v45, 16  ;;  %v79_v56 = vshrl.u32 %v71_v48, 16 }
  0x16   :  { %v88_v50 = vmul.u32 2146121005, %v80_v42  ;;  %v89_v51 = vmul.u32 2146121005, %v81_v43  ;;  %v84_v57 = vxor.u32 %v76_v49, %v68_v41  ;;  %v85_v60 = vxor.u32 %v77_v52, %v69_v44 }
  0x17   :  { %v90_v54 = vmul.u32 2146121005, %v82_v46  ;;  %v91_v55 = vmul.u32 2146121005, %v83_v47  ;;  %v86_v61 = vxor.u32 %v78_v53, %v70_v45  ;;  %v87_v0 = vxor.u32 %v79_v56, %v71_v48 }
  0x18   :  { %v96_v58 = vshrl.u32 %v88_v50, 15  ;;  %v97_v59 = vshrl.u32 %v89_v51, 15  ;;  %v92_v5 = vmul.u32 2146121005, %v84_v57  ;;  %v93_v6 = vmul.u32 2146121005, %v85_v60 }
  0x19   :  { %v98_v62 = vshrl.u32 %v90_v54, 15  ;;  %v99_v63 = vshrl.u32 %v91_v55, 15  ;;  %v94_v9 = vmul.u32 2146121005, %v86_v61  ;;  %v95_v13 = vmul.u32 2146121005, %v87_v0 }
  0x1a   :  { %v104_v1 = vxor.u32 %v96_v58, %v88_v50  ;;  %v105_v2 = vxor.u32 %v97_v59, %v89_v51  ;;  %v100_v16 = vshrl.u32 %v92_v5, 15  ;;  %v101_v17 = vshrl.u32 %v93_v6, 15  ;;  %v187_v40 = vld.sshfl [vmem:[#allocation1] sm:$0xff pattern:$0x73625140] }
  0x1b   :  { %v106_v3 = vxor.u32 %v98_v62, %v90_v54  ;;  %v107_v4 = vxor.u32 %v99_v63, %v91_v55  ;;  %v102_v20 = vshrl.u32 %v94_v9, 15  ;;  %v103_v21 = vshrl.u32 %v95_v13, 15  ;;  %v188_v41 = vld.sshfl [vmem:[#allocation1 + $0x8] sm:$0xff pattern:$0x73625140] }
  0x1c   :  { %v112_v7 = vmul.u32 2221713035, %v104_v1  ;;  %v113_v8 = vmul.u32 2221713035, %v105_v2  ;;  %v108_v24 = vxor.u32 %v100_v16, %v92_v5  ;;  %v109_v25 = vxor.u32 %v101_v17, %v93_v6 }
  0x1d   :  { %v114_v10 = vmul.u32 2221713035, %v106_v3  ;;  %v115_v11 = vmul.u32 2221713035, %v107_v4  ;;  %v110_v28 = vxor.u32 %v102_v20, %v94_v9  ;;  %v111_v29 = vxor.u32 %v103_v21, %v95_v13 }
  0x1e   :  { %v120_v14 = vshrl.u32 %v112_v7, 16  ;;  %v121_v15 = vshrl.u32 %v113_v8, 16  ;;  %v116_v32 = vmul.u32 2221713035, %v108_v24  ;;  %v117_v33 = vmul.u32 2221713035, %v109_v25 }
  0x1f   :  { %v122_v18 = vshrl.u32 %v114_v10, 16  ;;  %v123_v19 = vshrl.u32 %v115_v11, 16  ;;  %v118_v36 = vmul.u32 2221713035, %v110_v28  ;;  %v119_v37 = vmul.u32 2221713035, %v111_v29 }
  0x20   :  { %v128_v22 = vxor.u32 %v120_v14, %v112_v7  ;;  %v129_v23 = vxor.u32 %v121_v15, %v113_v8  ;;  %v124_v42 = vshrl.u32 %v116_v32, 16  ;;  %v125_v43 = vshrl.u32 %v117_v33, 16  ;;  %v189_v50 = vld.sshfl [vmem:[#allocation1 + $0x10] sm:$0xff pattern:$0x73625140] }
  0x21   :  { %v130_v26 = vxor.u32 %v122_v18, %v114_v10  ;;  %v131_v27 = vxor.u32 %v123_v19, %v115_v11  ;;  %v126_v46 = vshrl.u32 %v118_v36, 16  ;;  %v127_v47 = vshrl.u32 %v119_v37, 16  ;;  %v190_v55 = vld.sshfl [vmem:[#allocation1 + $0x18] sm:$0xff pattern:$0x73625140] }
  0x22   :  { %v136_v30 = vshrl.u32 %v128_v22, 9  ;;  %v137_v31 = vshrl.u32 %v129_v23, 9  ;;  %v132_v51 = vxor.u32 %v124_v42, %v116_v32  ;;  %v133_v52 = vxor.u32 %v125_v43, %v117_v33  ;;  %v192_v13 = vld.sshfl [vmem:[#allocation1 + $0x28] sm:$0xff pattern:$0x73625140] }
  0x23   :  { %v138_v34 = vshrl.u32 %v130_v26, 9  ;;  %v139_v35 = vshrl.u32 %v131_v27, 9  ;;  %v134_v56 = vxor.u32 %v126_v46, %v118_v36  ;;  %v135_v57 = vxor.u32 %v127_v47, %v119_v37  ;;  %v193_v17 = vld.sshfl [vmem:[#allocation1 + $0x30] sm:$0xff pattern:$0x73625140] }
  0x24   :  { %v144_v38 = vor.u32 1065353216, %v136_v30  ;;  %v145_v39 = vor.u32 1065353216, %v137_v31  ;;  %v140_v58 = vshrl.u32 %v132_v51, 9  ;;  %v141_v59 = vshrl.u32 %v133_v52, 9 }
  0x25   :  { %v146_v44 = vor.u32 1065353216, %v138_v34  ;;  %v147_v45 = vor.u32 1065353216, %v139_v35  ;;  %v142_v1 = vshrl.u32 %v134_v56, 9  ;;  %v143_v4 = vshrl.u32 %v135_v57, 9 }
  0x26   :  { %v243_v48 = vadd.f32 -1.0, %v144_v38  ;;  %v244_v49 = vadd.f32 -1.0, %v145_v39  ;;  %v148_v5 = vor.u32 1065353216, %v140_v58  ;;  %v149_v7 = vor.u32 1065353216, %v141_v59 }
  0x27   :  { %v245_v53 = vadd.f32 -1.0, %v146_v44  ;;  %v246_v54 = vadd.f32 -1.0, %v147_v45  ;;  %v150_v8 = vor.u32 1065353216, %v142_v1  ;;  %v151_v10 = vor.u32 1065353216, %v143_v4 }
  0x28   :  { %vm171_vm3 = vcmp.ge.f32.partialorder %v243_v48, %v300_v12  ;;  %vm172_vm4 = vcmp.ge.f32.partialorder %v244_v49, %v300_v12  ;;  %v247_v11 = vadd.f32 -1.0, %v148_v5  ;;  %v248_v15 = vadd.f32 -1.0, %v149_v7  ;;  %v194_v19 = vld.sshfl [vmem:[#allocation1 + $0x38] sm:$0xff pattern:$0x73625140] }
  0x29   :  { %vm173_vm5 = vcmp.ge.f32.partialorder %v245_v53, %v300_v12  ;;  %vm174_vm6 = vcmp.ge.f32.partialorder %v246_v54, %v300_v12  ;;  %v203_v60 = vsel %vm171_vm3, %v187_v40, 0.0  ;;  %v204_v61 = vsel %vm172_vm4, %v188_v41, 0.0  ;;  %v191_v20 = vld.sshfl [vmem:[#allocation1 + $0x20] sm:$0xff pattern:$0x73625140] }
  0x2a   :  { %v205_v62 = vsel %vm173_vm5, %v189_v50, 0.0  ;;  %v206_v63 = vsel %vm174_vm6, %v190_v55, 0.0  ;;  %v219_v0 = vrot.slane %v204_v61, 6  ;;  %v249_v16 = vadd.f32 -1.0, %v150_v8 }
  0x2b   :  { %v220_v2 = vrot.slane %v205_v62, 4  ;;  %v221_v3 = vrot.slane %v206_v63, 2  ;;  %v250_v18 = vadd.f32 -1.0, %v151_v10  ;;  %vm175_vm7 = vcmp.ge.f32.partialorder %v247_v11, %v300_v12 }
  0x2c   :  { %v226_v6 = vsel %vm225_vm0, %v203_v60, %v219_v0  ;;  %vm176_vm8 = vcmp.ge.f32.partialorder %v248_v15, %v300_v12  ;;  %vm177_vm9 = vcmp.ge.f32.partialorder %v249_v16, %v300_v12  ;;  %v207_v26 = vsel %vm175_vm7, %v191_v20, 0.0 }
  0x2d   :  { %v228_v9 = vsel %vm227_vm1, %v220_v2, %v221_v3  ;;  %vm178_vm10 = vcmp.ge.f32.partialorder %v250_v18, %v300_v12  ;;  %v208_v21 = vsel %vm176_vm8, %v192_v13, 0.0  ;;  %v209_v22 = vsel %vm177_vm9, %v193_v17, 0.0 }
  0x2e   :  { %v230_v14 = vsel %vm229_vm2, %v226_v6, %v228_v9  ;;  %v210_v23 = vsel %vm178_vm10, %v194_v19, 0.0  ;;  %v222_v24 = vrot.slane %v208_v21, 6  ;;  %v223_v25 = vrot.slane %v209_v22, 4 }
  0x2f   :  { %236 = vst [vmem:[%s325_s3] sm:$0xff] %v230_v14  ;;  %v224_v27 = vrot.slane %v210_v23, 2 }
  0x30   :  { %v231_v28 = vsel %vm225_vm0, %v207_v26, %v222_v24 }
  0x31   :  { %v232_v29 = vsel %vm227_vm1, %v223_v25, %v224_v27 }
  0x32   :  { %v233_v30 = vsel %vm229_vm2, %v231_v28, %v232_v29 }
  0x33   :  { %237 = vst [vmem:[%s325_s3 + $0x8] sm:$0xff] %v233_v30 }
  0x34   :  { %242 = vsyncpa [#allocation4], 1 }

</bundles_post_ra>
